<compile_context>
chip_gen: v7x
topology: tpu7x:2x2x1
jax: 0.10.0
libtpu: 0.0.40
codegen_flags: <defaults>
</compile_context>

<pallas_src>
import jax
import jax.numpy as jnp
from jax.experimental import pallas as pl
from jax.experimental.pallas import tpu as pltpu


def _gather_kernel(ids_ref, emb_hbm, out_ref, sem):
    # ids_ref : SMEM (B,) int32            (scalar prefetch)
    # emb_hbm : HBM  (n_classes, D)        (memory_space=pl.ANY, no auto-DMA)
    # out_ref : VMEM (B, D)                (output block)
    # sem     : DMA semaphores, shape (B,)
    B = out_ref.shape[0]
    n_classes = emb_hbm.shape[0]

    copies = []
    for i in range(B):  # B is static -> static Python loop, B scalar clamps
        row = jnp.clip(ids_ref[i], 0, n_classes - 1)
        cp = pltpu.make_async_copy(
            emb_hbm.at[pl.ds(row, 1), :],   # one (1, D) row from HBM
            out_ref.at[pl.ds(i, 1), :],     # directly into the output tile
            sem.at[i],
        )
        cp.start()
        copies.append(cp)

    # All B row DMAs are in flight and overlap; now drain them.
    for cp in copies:
        cp.wait()


@jax.jit
def class_embedder_forward(class_ids, emb_table):
    """class_ids: (B,) int, emb_table: (n_classes, D) float -> (B, 1, D)."""
    B = class_ids.shape[0]
    n_classes, D = emb_table.shape

    ids = class_ids.astype(jnp.int32)   # clamp happens in-kernel

    grid_spec = pltpu.PrefetchScalarGridSpec(
        num_scalar_prefetch=1,          # ids -> SMEM
        grid=(1,),                      # single step: B row-gather DMAs
        in_specs=[
            # Table stays in HBM; kernel issues its own row DMAs.
            pl.BlockSpec(memory_space=pl.ANY),
        ],
        out_specs=pl.BlockSpec((B, D), lambda i, ids_pref: (0, 0)),
        scratch_shapes=[pltpu.SemaphoreType.DMA((B,))],
    )

    out = pl.pallas_call(
        _gather_kernel,
        out_shape=jax.ShapeDtypeStruct((B, D), emb_table.dtype),
        grid_spec=grid_spec,
        compiler_params=pltpu.CompilerParams(
            dimension_semantics=("arbitrary",),
        ),
    )(ids, emb_table)

    # batch[key][:, None] -> embedding gives (B, 1, D)
    return out.reshape(B, 1, D)


class ClassEmbedder:
    """JAX/Pallas port of ldm ClassEmbedder (deterministic synthetic weights)."""

    def __init__(self, embed_dim, n_classes=1000, key='class', rng_key=None):
        self.key = key
        if rng_key is None:
            rng_key = jax.random.PRNGKey(0)
        # nn.Embedding default init is N(0, 1)
        self.embedding_weight = jax.random.normal(
            rng_key, (n_classes, embed_dim), dtype=jnp.float32
        )

    def __call__(self, batch, key=None):
        if key is None:
            key = self.key
        c = batch[key].astype(jnp.int32)          # (B,)
        return class_embedder_forward(c, self.embedding_weight)


if __name__ == "__main__":
    root = jax.random.PRNGKey(0)
    k_emb, k_ids = jax.random.split(root)

    n_classes = 16
    embed_dim = 128
    batch_size = 8

    embedder = ClassEmbedder(embed_dim=embed_dim, n_classes=n_classes,
                             key='class', rng_key=k_emb)

    class_ids = jax.random.randint(k_ids, (batch_size,), 0, n_classes,
                                   dtype=jnp.int32)
    batch = {'class': class_ids}

    out = embedder(batch)
    out = jax.block_until_ready(out)

    # Pure-JAX reference check of the gather semantics.
    ref = jnp.take(embedder.embedding_weight, class_ids, axis=0)[:, None, :]
    assert out.shape == (batch_size, 1, embed_dim), out.shape
    assert out.dtype == jnp.float32
    assert jnp.allclose(out, ref), "Pallas embedding lookup mismatch"

    print("KERNEL_OK")
</pallas_src>

<mosaic_0001>
module attributes {stable_mosaic.version = 11 : i64} {
  func.func @_gather_kernel(%arg0: i32, %arg1: memref<8xi32, #tpu.memory_space<smem>>, %arg2: memref<16x128xf32, #tpu.memory_space<any>>, %arg3: memref<8x128xf32, #tpu.memory_space<vmem>>, %arg4: memref<8x!tpu.dma_semaphore, #tpu.memory_space<semaphore_mem>>) attributes {dimension_semantics = [#tpu.dimension_semantics<arbitrary>], iteration_bounds = array<i64: 1>, scalar_prefetch = 1 : i64, scratch_operands = 1 : i64, tpu.core_type = #tpu.core_type<tc>, window_params = [{}, {pipeline_mode = #tpu.pipeline_mode<synchronous>, transform_indices = @transform_1, window_bounds = array<i64: 8, 128>}]} {
    %c0 = arith.constant 0 : index
    %0 = memref.load %arg1[%c0] : memref<8xi32, #tpu.memory_space<smem>>
    %c0_i32 = arith.constant 0 : i32
    %c15_i32 = arith.constant 15 : i32
    %1 = arith.maxsi %c0_i32, %0 : i32
    %2 = arith.minsi %c15_i32, %1 : i32
    %c0_i32_0 = arith.constant 0 : i32
    %c0_i32_1 = arith.constant 0 : i32
    %3 = tpu.memref_slice %arg2[%2, %c0_i32_1] : memref<16x128xf32, #tpu.memory_space<any>> -> memref<1x128xf32, #tpu.memory_space<any>>
    %c0_i32_2 = arith.constant 0 : i32
    %c0_i32_3 = arith.constant 0 : i32
    %4 = tpu.memref_slice %arg3[%c0_i32_2, %c0_i32_3] : memref<8x128xf32, #tpu.memory_space<vmem>> -> memref<1x128xf32, #tpu.memory_space<vmem>>
    %5 = tpu.memref_slice %arg4[%c0_i32_0] : memref<8x!tpu.dma_semaphore, #tpu.memory_space<semaphore_mem>> -> memref<1x!tpu.dma_semaphore, #tpu.memory_space<semaphore_mem>>
    %6 = tpu.memref_squeeze %5 : memref<1x!tpu.dma_semaphore, #tpu.memory_space<semaphore_mem>> -> memref<!tpu.dma_semaphore, #tpu.memory_space<semaphore_mem>>
    tpu.enqueue_dma source(%3 : memref<1x128xf32, #tpu.memory_space<any>>) target(%4 : memref<1x128xf32, #tpu.memory_space<vmem>>) target_semaphore(%6 : memref<!tpu.dma_semaphore, #tpu.memory_space<semaphore_mem>>)
    %c1 = arith.constant 1 : index
    %7 = memref.load %arg1[%c1] : memref<8xi32, #tpu.memory_space<smem>>
    %c0_i32_4 = arith.constant 0 : i32
    %c15_i32_5 = arith.constant 15 : i32
    %8 = arith.maxsi %c0_i32_4, %7 : i32
    %9 = arith.minsi %c15_i32_5, %8 : i32
    %c1_i32 = arith.constant 1 : i32
    %c0_i32_6 = arith.constant 0 : i32
    %10 = tpu.memref_slice %arg2[%9, %c0_i32_6] : memref<16x128xf32, #tpu.memory_space<any>> -> memref<1x128xf32, #tpu.memory_space<any>>
    %c1_i32_7 = arith.constant 1 : i32
    %c0_i32_8 = arith.constant 0 : i32
    %11 = tpu.memref_slice %arg3[%c1_i32_7, %c0_i32_8] : memref<8x128xf32, #tpu.memory_space<vmem>> -> memref<1x128xf32, #tpu.memory_space<vmem>>
    %12 = tpu.memref_slice %arg4[%c1_i32] : memref<8x!tpu.dma_semaphore, #tpu.memory_space<semaphore_mem>> -> memref<1x!tpu.dma_semaphore, #tpu.memory_space<semaphore_mem>>
    %13 = tpu.memref_squeeze %12 : memref<1x!tpu.dma_semaphore, #tpu.memory_space<semaphore_mem>> -> memref<!tpu.dma_semaphore, #tpu.memory_space<semaphore_mem>>
    tpu.enqueue_dma source(%10 : memref<1x128xf32, #tpu.memory_space<any>>) target(%11 : memref<1x128xf32, #tpu.memory_space<vmem>>) target_semaphore(%13 : memref<!tpu.dma_semaphore, #tpu.memory_space<semaphore_mem>>)
    %c2 = arith.constant 2 : index
    %14 = memref.load %arg1[%c2] : memref<8xi32, #tpu.memory_space<smem>>
    %c0_i32_9 = arith.constant 0 : i32
    %c15_i32_10 = arith.constant 15 : i32
    %15 = arith.maxsi %c0_i32_9, %14 : i32
    %16 = arith.minsi %c15_i32_10, %15 : i32
    %c2_i32 = arith.constant 2 : i32
    %c0_i32_11 = arith.constant 0 : i32
    %17 = tpu.memref_slice %arg2[%16, %c0_i32_11] : memref<16x128xf32, #tpu.memory_space<any>> -> memref<1x128xf32, #tpu.memory_space<any>>
    %c2_i32_12 = arith.constant 2 : i32
    %c0_i32_13 = arith.constant 0 : i32
    %18 = tpu.memref_slice %arg3[%c2_i32_12, %c0_i32_13] : memref<8x128xf32, #tpu.memory_space<vmem>> -> memref<1x128xf32, #tpu.memory_space<vmem>>
    %19 = tpu.memref_slice %arg4[%c2_i32] : memref<8x!tpu.dma_semaphore, #tpu.memory_space<semaphore_mem>> -> memref<1x!tpu.dma_semaphore, #tpu.memory_space<semaphore_mem>>
    %20 = tpu.memref_squeeze %19 : memref<1x!tpu.dma_semaphore, #tpu.memory_space<semaphore_mem>> -> memref<!tpu.dma_semaphore, #tpu.memory_space<semaphore_mem>>
    tpu.enqueue_dma source(%17 : memref<1x128xf32, #tpu.memory_space<any>>) target(%18 : memref<1x128xf32, #tpu.memory_space<vmem>>) target_semaphore(%20 : memref<!tpu.dma_semaphore, #tpu.memory_space<semaphore_mem>>)
    %c3 = arith.constant 3 : index
    %21 = memref.load %arg1[%c3] : memref<8xi32, #tpu.memory_space<smem>>
    %c0_i32_14 = arith.constant 0 : i32
    %c15_i32_15 = arith.constant 15 : i32
    %22 = arith.maxsi %c0_i32_14, %21 : i32
    %23 = arith.minsi %c15_i32_15, %22 : i32
    %c3_i32 = arith.constant 3 : i32
    %c0_i32_16 = arith.constant 0 : i32
    %24 = tpu.memref_slice %arg2[%23, %c0_i32_16] : memref<16x128xf32, #tpu.memory_space<any>> -> memref<1x128xf32, #tpu.memory_space<any>>
    %c3_i32_17 = arith.constant 3 : i32
    %c0_i32_18 = arith.constant 0 : i32
    %25 = tpu.memref_slice %arg3[%c3_i32_17, %c0_i32_18] : memref<8x128xf32, #tpu.memory_space<vmem>> -> memref<1x128xf32, #tpu.memory_space<vmem>>
    %26 = tpu.memref_slice %arg4[%c3_i32] : memref<8x!tpu.dma_semaphore, #tpu.memory_space<semaphore_mem>> -> memref<1x!tpu.dma_semaphore, #tpu.memory_space<semaphore_mem>>
    %27 = tpu.memref_squeeze %26 : memref<1x!tpu.dma_semaphore, #tpu.memory_space<semaphore_mem>> -> memref<!tpu.dma_semaphore, #tpu.memory_space<semaphore_mem>>
    tpu.enqueue_dma source(%24 : memref<1x128xf32, #tpu.memory_space<any>>) target(%25 : memref<1x128xf32, #tpu.memory_space<vmem>>) target_semaphore(%27 : memref<!tpu.dma_semaphore, #tpu.memory_space<semaphore_mem>>)
    %c4 = arith.constant 4 : index
    %28 = memref.load %arg1[%c4] : memref<8xi32, #tpu.memory_space<smem>>
    %c0_i32_19 = arith.constant 0 : i32
    %c15_i32_20 = arith.constant 15 : i32
    %29 = arith.maxsi %c0_i32_19, %28 : i32
    %30 = arith.minsi %c15_i32_20, %29 : i32
    %c4_i32 = arith.constant 4 : i32
    %c0_i32_21 = arith.constant 0 : i32
    %31 = tpu.memref_slice %arg2[%30, %c0_i32_21] : memref<16x128xf32, #tpu.memory_space<any>> -> memref<1x128xf32, #tpu.memory_space<any>>
    %c4_i32_22 = arith.constant 4 : i32
    %c0_i32_23 = arith.constant 0 : i32
    %32 = tpu.memref_slice %arg3[%c4_i32_22, %c0_i32_23] : memref<8x128xf32, #tpu.memory_space<vmem>> -> memref<1x128xf32, #tpu.memory_space<vmem>>
    %33 = tpu.memref_slice %arg4[%c4_i32] : memref<8x!tpu.dma_semaphore, #tpu.memory_space<semaphore_mem>> -> memref<1x!tpu.dma_semaphore, #tpu.memory_space<semaphore_mem>>
    %34 = tpu.memref_squeeze %33 : memref<1x!tpu.dma_semaphore, #tpu.memory_space<semaphore_mem>> -> memref<!tpu.dma_semaphore, #tpu.memory_space<semaphore_mem>>
    tpu.enqueue_dma source(%31 : memref<1x128xf32, #tpu.memory_space<any>>) target(%32 : memref<1x128xf32, #tpu.memory_space<vmem>>) target_semaphore(%34 : memref<!tpu.dma_semaphore, #tpu.memory_space<semaphore_mem>>)
    %c5 = arith.constant 5 : index
    %35 = memref.load %arg1[%c5] : memref<8xi32, #tpu.memory_space<smem>>
    %c0_i32_24 = arith.constant 0 : i32
    %c15_i32_25 = arith.constant 15 : i32
    %36 = arith.maxsi %c0_i32_24, %35 : i32
    %37 = arith.minsi %c15_i32_25, %36 : i32
    %c5_i32 = arith.constant 5 : i32
    %c0_i32_26 = arith.constant 0 : i32
    %38 = tpu.memref_slice %arg2[%37, %c0_i32_26] : memref<16x128xf32, #tpu.memory_space<any>> -> memref<1x128xf32, #tpu.memory_space<any>>
    %c5_i32_27 = arith.constant 5 : i32
    %c0_i32_28 = arith.constant 0 : i32
    %39 = tpu.memref_slice %arg3[%c5_i32_27, %c0_i32_28] : memref<8x128xf32, #tpu.memory_space<vmem>> -> memref<1x128xf32, #tpu.memory_space<vmem>>
    %40 = tpu.memref_slice %arg4[%c5_i32] : memref<8x!tpu.dma_semaphore, #tpu.memory_space<semaphore_mem>> -> memref<1x!tpu.dma_semaphore, #tpu.memory_space<semaphore_mem>>
    %41 = tpu.memref_squeeze %40 : memref<1x!tpu.dma_semaphore, #tpu.memory_space<semaphore_mem>> -> memref<!tpu.dma_semaphore, #tpu.memory_space<semaphore_mem>>
    tpu.enqueue_dma source(%38 : memref<1x128xf32, #tpu.memory_space<any>>) target(%39 : memref<1x128xf32, #tpu.memory_space<vmem>>) target_semaphore(%41 : memref<!tpu.dma_semaphore, #tpu.memory_space<semaphore_mem>>)
    %c6 = arith.constant 6 : index
    %42 = memref.load %arg1[%c6] : memref<8xi32, #tpu.memory_space<smem>>
    %c0_i32_29 = arith.constant 0 : i32
    %c15_i32_30 = arith.constant 15 : i32
    %43 = arith.maxsi %c0_i32_29, %42 : i32
    %44 = arith.minsi %c15_i32_30, %43 : i32
    %c6_i32 = arith.constant 6 : i32
    %c0_i32_31 = arith.constant 0 : i32
    %45 = tpu.memref_slice %arg2[%44, %c0_i32_31] : memref<16x128xf32, #tpu.memory_space<any>> -> memref<1x128xf32, #tpu.memory_space<any>>
    %c6_i32_32 = arith.constant 6 : i32
    %c0_i32_33 = arith.constant 0 : i32
    %46 = tpu.memref_slice %arg3[%c6_i32_32, %c0_i32_33] : memref<8x128xf32, #tpu.memory_space<vmem>> -> memref<1x128xf32, #tpu.memory_space<vmem>>
    %47 = tpu.memref_slice %arg4[%c6_i32] : memref<8x!tpu.dma_semaphore, #tpu.memory_space<semaphore_mem>> -> memref<1x!tpu.dma_semaphore, #tpu.memory_space<semaphore_mem>>
    %48 = tpu.memref_squeeze %47 : memref<1x!tpu.dma_semaphore, #tpu.memory_space<semaphore_mem>> -> memref<!tpu.dma_semaphore, #tpu.memory_space<semaphore_mem>>
    tpu.enqueue_dma source(%45 : memref<1x128xf32, #tpu.memory_space<any>>) target(%46 : memref<1x128xf32, #tpu.memory_space<vmem>>) target_semaphore(%48 : memref<!tpu.dma_semaphore, #tpu.memory_space<semaphore_mem>>)
    %c7 = arith.constant 7 : index
    %49 = memref.load %arg1[%c7] : memref<8xi32, #tpu.memory_space<smem>>
    %c0_i32_34 = arith.constant 0 : i32
    %c15_i32_35 = arith.constant 15 : i32
    %50 = arith.maxsi %c0_i32_34, %49 : i32
    %51 = arith.minsi %c15_i32_35, %50 : i32
    %c7_i32 = arith.constant 7 : i32
    %c0_i32_36 = arith.constant 0 : i32
    %52 = tpu.memref_slice %arg2[%51, %c0_i32_36] : memref<16x128xf32, #tpu.memory_space<any>> -> memref<1x128xf32, #tpu.memory_space<any>>
    %c7_i32_37 = arith.constant 7 : i32
    %c0_i32_38 = arith.constant 0 : i32
    %53 = tpu.memref_slice %arg3[%c7_i32_37, %c0_i32_38] : memref<8x128xf32, #tpu.memory_space<vmem>> -> memref<1x128xf32, #tpu.memory_space<vmem>>
    %54 = tpu.memref_slice %arg4[%c7_i32] : memref<8x!tpu.dma_semaphore, #tpu.memory_space<semaphore_mem>> -> memref<1x!tpu.dma_semaphore, #tpu.memory_space<semaphore_mem>>
    %55 = tpu.memref_squeeze %54 : memref<1x!tpu.dma_semaphore, #tpu.memory_space<semaphore_mem>> -> memref<!tpu.dma_semaphore, #tpu.memory_space<semaphore_mem>>
    tpu.enqueue_dma source(%52 : memref<1x128xf32, #tpu.memory_space<any>>) target(%53 : memref<1x128xf32, #tpu.memory_space<vmem>>) target_semaphore(%55 : memref<!tpu.dma_semaphore, #tpu.memory_space<semaphore_mem>>)
    %c0_i32_39 = arith.constant 0 : i32
    %c0_i32_40 = arith.constant 0 : i32
    %56 = tpu.memref_slice %arg2[%2, %c0_i32_40] : memref<16x128xf32, #tpu.memory_space<any>> -> memref<1x128xf32, #tpu.memory_space<any>>
    %c0_i32_41 = arith.constant 0 : i32
    %c0_i32_42 = arith.constant 0 : i32
    %57 = tpu.memref_slice %arg3[%c0_i32_41, %c0_i32_42] : memref<8x128xf32, #tpu.memory_space<vmem>> -> memref<1x128xf32, #tpu.memory_space<vmem>>
    %58 = tpu.memref_slice %arg4[%c0_i32_39] : memref<8x!tpu.dma_semaphore, #tpu.memory_space<semaphore_mem>> -> memref<1x!tpu.dma_semaphore, #tpu.memory_space<semaphore_mem>>
    %59 = tpu.memref_squeeze %58 : memref<1x!tpu.dma_semaphore, #tpu.memory_space<semaphore_mem>> -> memref<!tpu.dma_semaphore, #tpu.memory_space<semaphore_mem>>
    tpu.wait_dma2 semaphore(%59 : memref<!tpu.dma_semaphore, #tpu.memory_space<semaphore_mem>>) src(%56 : memref<1x128xf32, #tpu.memory_space<any>>) dst(%57 : memref<1x128xf32, #tpu.memory_space<vmem>>)
    %c1_i32_43 = arith.constant 1 : i32
    %c0_i32_44 = arith.constant 0 : i32
    %60 = tpu.memref_slice %arg2[%9, %c0_i32_44] : memref<16x128xf32, #tpu.memory_space<any>> -> memref<1x128xf32, #tpu.memory_space<any>>
    %c1_i32_45 = arith.constant 1 : i32
    %c0_i32_46 = arith.constant 0 : i32
    %61 = tpu.memref_slice %arg3[%c1_i32_45, %c0_i32_46] : memref<8x128xf32, #tpu.memory_space<vmem>> -> memref<1x128xf32, #tpu.memory_space<vmem>>
    %62 = tpu.memref_slice %arg4[%c1_i32_43] : memref<8x!tpu.dma_semaphore, #tpu.memory_space<semaphore_mem>> -> memref<1x!tpu.dma_semaphore, #tpu.memory_space<semaphore_mem>>
    %63 = tpu.memref_squeeze %62 : memref<1x!tpu.dma_semaphore, #tpu.memory_space<semaphore_mem>> -> memref<!tpu.dma_semaphore, #tpu.memory_space<semaphore_mem>>
    tpu.wait_dma2 semaphore(%63 : memref<!tpu.dma_semaphore, #tpu.memory_space<semaphore_mem>>) src(%60 : memref<1x128xf32, #tpu.memory_space<any>>) dst(%61 : memref<1x128xf32, #tpu.memory_space<vmem>>)
    %c2_i32_47 = arith.constant 2 : i32
    %c0_i32_48 = arith.constant 0 : i32
    %64 = tpu.memref_slice %arg2[%16, %c0_i32_48] : memref<16x128xf32, #tpu.memory_space<any>> -> memref<1x128xf32, #tpu.memory_space<any>>
    %c2_i32_49 = arith.constant 2 : i32
    %c0_i32_50 = arith.constant 0 : i32
    %65 = tpu.memref_slice %arg3[%c2_i32_49, %c0_i32_50] : memref<8x128xf32, #tpu.memory_space<vmem>> -> memref<1x128xf32, #tpu.memory_space<vmem>>
    %66 = tpu.memref_slice %arg4[%c2_i32_47] : memref<8x!tpu.dma_semaphore, #tpu.memory_space<semaphore_mem>> -> memref<1x!tpu.dma_semaphore, #tpu.memory_space<semaphore_mem>>
    %67 = tpu.memref_squeeze %66 : memref<1x!tpu.dma_semaphore, #tpu.memory_space<semaphore_mem>> -> memref<!tpu.dma_semaphore, #tpu.memory_space<semaphore_mem>>
    tpu.wait_dma2 semaphore(%67 : memref<!tpu.dma_semaphore, #tpu.memory_space<semaphore_mem>>) src(%64 : memref<1x128xf32, #tpu.memory_space<any>>) dst(%65 : memref<1x128xf32, #tpu.memory_space<vmem>>)
    %c3_i32_51 = arith.constant 3 : i32
    %c0_i32_52 = arith.constant 0 : i32
    %68 = tpu.memref_slice %arg2[%23, %c0_i32_52] : memref<16x128xf32, #tpu.memory_space<any>> -> memref<1x128xf32, #tpu.memory_space<any>>
    %c3_i32_53 = arith.constant 3 : i32
    %c0_i32_54 = arith.constant 0 : i32
    %69 = tpu.memref_slice %arg3[%c3_i32_53, %c0_i32_54] : memref<8x128xf32, #tpu.memory_space<vmem>> -> memref<1x128xf32, #tpu.memory_space<vmem>>
    %70 = tpu.memref_slice %arg4[%c3_i32_51] : memref<8x!tpu.dma_semaphore, #tpu.memory_space<semaphore_mem>> -> memref<1x!tpu.dma_semaphore, #tpu.memory_space<semaphore_mem>>
    %71 = tpu.memref_squeeze %70 : memref<1x!tpu.dma_semaphore, #tpu.memory_space<semaphore_mem>> -> memref<!tpu.dma_semaphore, #tpu.memory_space<semaphore_mem>>
    tpu.wait_dma2 semaphore(%71 : memref<!tpu.dma_semaphore, #tpu.memory_space<semaphore_mem>>) src(%68 : memref<1x128xf32, #tpu.memory_space<any>>) dst(%69 : memref<1x128xf32, #tpu.memory_space<vmem>>)
    %c4_i32_55 = arith.constant 4 : i32
    %c0_i32_56 = arith.constant 0 : i32
    %72 = tpu.memref_slice %arg2[%30, %c0_i32_56] : memref<16x128xf32, #tpu.memory_space<any>> -> memref<1x128xf32, #tpu.memory_space<any>>
    %c4_i32_57 = arith.constant 4 : i32
    %c0_i32_58 = arith.constant 0 : i32
    %73 = tpu.memref_slice %arg3[%c4_i32_57, %c0_i32_58] : memref<8x128xf32, #tpu.memory_space<vmem>> -> memref<1x128xf32, #tpu.memory_space<vmem>>
    %74 = tpu.memref_slice %arg4[%c4_i32_55] : memref<8x!tpu.dma_semaphore, #tpu.memory_space<semaphore_mem>> -> memref<1x!tpu.dma_semaphore, #tpu.memory_space<semaphore_mem>>
    %75 = tpu.memref_squeeze %74 : memref<1x!tpu.dma_semaphore, #tpu.memory_space<semaphore_mem>> -> memref<!tpu.dma_semaphore, #tpu.memory_space<semaphore_mem>>
    tpu.wait_dma2 semaphore(%75 : memref<!tpu.dma_semaphore, #tpu.memory_space<semaphore_mem>>) src(%72 : memref<1x128xf32, #tpu.memory_space<any>>) dst(%73 : memref<1x128xf32, #tpu.memory_space<vmem>>)
    %c5_i32_59 = arith.constant 5 : i32
    %c0_i32_60 = arith.constant 0 : i32
    %76 = tpu.memref_slice %arg2[%37, %c0_i32_60] : memref<16x128xf32, #tpu.memory_space<any>> -> memref<1x128xf32, #tpu.memory_space<any>>
    %c5_i32_61 = arith.constant 5 : i32
    %c0_i32_62 = arith.constant 0 : i32
    %77 = tpu.memref_slice %arg3[%c5_i32_61, %c0_i32_62] : memref<8x128xf32, #tpu.memory_space<vmem>> -> memref<1x128xf32, #tpu.memory_space<vmem>>
    %78 = tpu.memref_slice %arg4[%c5_i32_59] : memref<8x!tpu.dma_semaphore, #tpu.memory_space<semaphore_mem>> -> memref<1x!tpu.dma_semaphore, #tpu.memory_space<semaphore_mem>>
    %79 = tpu.memref_squeeze %78 : memref<1x!tpu.dma_semaphore, #tpu.memory_space<semaphore_mem>> -> memref<!tpu.dma_semaphore, #tpu.memory_space<semaphore_mem>>
    tpu.wait_dma2 semaphore(%79 : memref<!tpu.dma_semaphore, #tpu.memory_space<semaphore_mem>>) src(%76 : memref<1x128xf32, #tpu.memory_space<any>>) dst(%77 : memref<1x128xf32, #tpu.memory_space<vmem>>)
    %c6_i32_63 = arith.constant 6 : i32
    %c0_i32_64 = arith.constant 0 : i32
    %80 = tpu.memref_slice %arg2[%44, %c0_i32_64] : memref<16x128xf32, #tpu.memory_space<any>> -> memref<1x128xf32, #tpu.memory_space<any>>
    %c6_i32_65 = arith.constant 6 : i32
    %c0_i32_66 = arith.constant 0 : i32
    %81 = tpu.memref_slice %arg3[%c6_i32_65, %c0_i32_66] : memref<8x128xf32, #tpu.memory_space<vmem>> -> memref<1x128xf32, #tpu.memory_space<vmem>>
    %82 = tpu.memref_slice %arg4[%c6_i32_63] : memref<8x!tpu.dma_semaphore, #tpu.memory_space<semaphore_mem>> -> memref<1x!tpu.dma_semaphore, #tpu.memory_space<semaphore_mem>>
    %83 = tpu.memref_squeeze %82 : memref<1x!tpu.dma_semaphore, #tpu.memory_space<semaphore_mem>> -> memref<!tpu.dma_semaphore, #tpu.memory_space<semaphore_mem>>
    tpu.wait_dma2 semaphore(%83 : memref<!tpu.dma_semaphore, #tpu.memory_space<semaphore_mem>>) src(%80 : memref<1x128xf32, #tpu.memory_space<any>>) dst(%81 : memref<1x128xf32, #tpu.memory_space<vmem>>)
    %c7_i32_67 = arith.constant 7 : i32
    %c0_i32_68 = arith.constant 0 : i32
    %84 = tpu.memref_slice %arg2[%51, %c0_i32_68] : memref<16x128xf32, #tpu.memory_space<any>> -> memref<1x128xf32, #tpu.memory_space<any>>
    %c7_i32_69 = arith.constant 7 : i32
    %c0_i32_70 = arith.constant 0 : i32
    %85 = tpu.memref_slice %arg3[%c7_i32_69, %c0_i32_70] : memref<8x128xf32, #tpu.memory_space<vmem>> -> memref<1x128xf32, #tpu.memory_space<vmem>>
    %86 = tpu.memref_slice %arg4[%c7_i32_67] : memref<8x!tpu.dma_semaphore, #tpu.memory_space<semaphore_mem>> -> memref<1x!tpu.dma_semaphore, #tpu.memory_space<semaphore_mem>>
    %87 = tpu.memref_squeeze %86 : memref<1x!tpu.dma_semaphore, #tpu.memory_space<semaphore_mem>> -> memref<!tpu.dma_semaphore, #tpu.memory_space<semaphore_mem>>
    tpu.wait_dma2 semaphore(%87 : memref<!tpu.dma_semaphore, #tpu.memory_space<semaphore_mem>>) src(%84 : memref<1x128xf32, #tpu.memory_space<any>>) dst(%85 : memref<1x128xf32, #tpu.memory_space<vmem>>)
    return
  }
  func.func @transform_1(%arg0: i32, %arg1: memref<8xi32, #tpu.memory_space<smem>>) -> (i32, i32) {
    %c0_i32 = arith.constant 0 : i32
    %c0_i32_0 = arith.constant 0 : i32
    %c0_i32_1 = arith.constant 0 : i32
    return %c0_i32, %c0_i32_0 : i32, i32
  }
}

</mosaic_0001>

<bundles_post_ra>
// kernel: class_embedder_forward.1
= control target key start
LH: loop header
LB: loop body
LE: loop exit
PB: predicated region body
PF: predicated region fallthrough
CT: control target
= control target key end

     0   :  { %s804_s0 = inlined_call_operand.hbm [shape: s32[8], index: 0, kind: input, shape index: {}]   ;;  %s805_s1 = inlined_call_operand.hbm [shape: f32[16,128], index: 1, kind: input, shape index: {}]   ;;  %s806_s2 = inlined_call_operand.hbm [shape: f32[8,128], index: 2, kind: output, shape index: {}]  }
   0x1   :  { %s360_s11 = scalar_lea.hbm %s804_s0, 16 }
   0x2   :  { %p361_p0 = scmp.ne.s32.totalorder %s804_s0, %s360_s11  ;;  %p364_p1 = scmp.lt.u32.totalorder %s360_s11, %s804_s0 }
   0x4   :  { %p366_p2 = pnand %p364_p1, %p361_p0 }
   0x6   :  { %369 = shalt.err (!%p366_p2)  }
   0x7   :  { %s604_s16 = smov [#allocation4]  }
   0x8   :  { %8 = dma.hbm_to_smem %s804_s0, 16, %s604_s16, [#allocation3] }
   0x9   :  { %584 = dma.done.wait [#allocation3], 16 }
   0xa   :  { %585 = vsyncadd [#allocation3], 4294967280 }
   0xb   :  { %10 = sfence }
   0xc   :  { %11 = vsyncpa [#allocation6], 0  ;;  %s12_s19 = sld [smem:[#allocation4]]  ;;  %s605_s20 = smov [#allocation5]  }
   0xd   :  { %s26_s21 = sshll.u32 %s605_s20, 4  ;;  %s278_s22 = sld [smem:[#allocation4 + $0x1]]  ;;  %s640_s21 = int_to_ptr.vmem [resolvable:$true] %s26_s21 }
   0xe   :  { %s606_s23 = smov [#allocation5 + $0x1]   ;;  %s642_s25 = sld [smem:[#allocation4 + $0x2]] }
   0xf   :  { %s46_s24 = sshll.u32 %s606_s23, 4  ;;  %s607_s26 = smov [#allocation5 + $0x2]   ;;  %s644_s24 = int_to_ptr.vmem [resolvable:$true] %s46_s24 }
  0x10   :  { %s646_s27 = sshll.u32 %s607_s26, 4  ;;  %s648_s0 = sld [smem:[#allocation4 + $0x3]]  ;;  %s67_s27 = int_to_ptr.vmem [resolvable:$true] %s646_s27 }
  0x11   :  { %s657_s8 = scalar_lea.hbm %s805_s1, 256 }
  0x12   :  { %p13_p3 = scmp.gt.s32.totalorder %s12_s19, 0  ;;  %p272_p4 = scmp.lt.s32.totalorder %s12_s19, 15 }
  0x13   :  { %p31_p5 = scmp.gt.s32.totalorder %s278_s22, 0  ;;  %p279_p6 = scmp.lt.s32.totalorder %s278_s22, 15 }
  0x14   :  { %s811_s19 = smov (!%p13_p3, %s12_s19), 0  ;;  %p51_p7 = scmp.gt.s32.totalorder %s642_s25, 0 }
  0x15   :  { %s813_s22 = smov (!%p31_p5, %s278_s22), 0  ;;  %s815_s19 = smov (!%p272_p4, %s811_s19), 15 }
  0x16   :  { %s817_s22 = smov (!%p279_p6, %s813_s22), 15  ;;  %s277_s28 = sshll.u32 %s815_s19, 4 }
  0x17   :  { %s18_s3 = scalar_lea.hbm %s805_s1, %s277_s28  ;;  %s284_s4 = sshll.u32 %s817_s22, 4 }
  0x18   :  { %s370_s5 = scalar_lea.hbm %s18_s3, 16  ;;  %p373_p9 = scmp.lt.u32.totalorder %s18_s3, %s805_s1 }
  0x19   :  { %p371_p8 = scmp.ne.s32.totalorder %s18_s3, %s370_s5  ;;  %p374_p10 = scmp.lt.u32.totalorder %s657_s8, %s370_s5 }
  0x1a   :  { %p376_p12 = scmp.lt.u32.totalorder %s370_s5, %s18_s3 }
  0x1b   :  { %p375_p11 = por %p374_p10, %p373_p9 }
  0x1d   :  { %p377_p13 = por %p376_p12, %p375_p11 }
  0x1f   :  { %p378_p0 = pnand %p377_p13, %p371_p8 }
  0x21   :  { %381 = shalt.err (!%p378_p0)  }
  0x22   :  { %s382_s11 = scalar_lea.vmem %s640_s21, 16  ;;  %s666_s12 = scalar_lea.vmem %s640_s21, 128 }
  0x23   :  { %p383_p1 = scmp.ne.s32.totalorder %s640_s21, %s382_s11  ;;  %p807_p2 = scmp.lt.s32.totalorder %s640_s21, %s640_s21 }
  0x24   :  { %p388_p3 = scmp.lt.s32.totalorder %s666_s12, %s382_s11 }
  0x26   :  { %p389_p4 = por %p388_p3, %p807_p2 }
  0x28   :  { %p390_p5 = pnand %p389_p4, %p383_p1 }
  0x2a   :  { %393 = shalt.err (!%p390_p5)  }
  0x2b   :  { %29 = dma.hbm_to_vmem [thread:$0]  %s18_s3, 16, %s640_s21, [#allocation2] }
  0x2c   :  { %s36_s15 = scalar_lea.hbm %s805_s1, %s284_s4  ;;  %p286_p6 = scmp.lt.s32.totalorder %s642_s25, 15 }
  0x2d   :  { %s394_s16 = scalar_lea.hbm %s36_s15, 16  ;;  %p397_p9 = scmp.lt.u32.totalorder %s36_s15, %s805_s1 }
  0x2e   :  { %p395_p8 = scmp.ne.s32.totalorder %s36_s15, %s394_s16  ;;  %p398_p10 = scmp.lt.u32.totalorder %s657_s8, %s394_s16 }
  0x2f   :  { %p400_p12 = scmp.lt.u32.totalorder %s394_s16, %s36_s15 }
  0x30   :  { %p399_p11 = por %p398_p10, %p397_p9 }
  0x32   :  { %p401_p13 = por %p400_p12, %p399_p11 }
  0x34   :  { %p402_p0 = pnand %p401_p13, %p395_p8 }
  0x36   :  { %405 = shalt.err (!%p402_p0)  }
  0x37   :  { %s406_s19 = scalar_lea.vmem %s644_s24, 16  ;;  %p411_p3 = scmp.lt.s32.totalorder %s644_s24, %s640_s21 }
  0x38   :  { %p407_p1 = scmp.ne.s32.totalorder %s644_s24, %s406_s19  ;;  %p412_p4 = scmp.lt.s32.totalorder %s666_s12, %s406_s19 }
  0x3a   :  { %p413_p5 = por %p412_p4, %p411_p3 }
  0x3c   :  { %p414_p2 = pnand %p413_p5, %p407_p1 }
  0x3e   :  { %417 = shalt.err (!%p414_p2)  }
  0x3f   :  { %49 = dma.hbm_to_vmem [thread:$0]  %s36_s15, 16, %s644_s24, [#allocation2 + $0x1] }
  0x40   :  { %s52_s20 = scalar_select %p51_p7, %s642_s25, 0 }
  0x41   :  { %p71_p8 = scmp.gt.s32.totalorder %s648_s0, 0  ;;  %p293_p9 = scmp.lt.s32.totalorder %s648_s0, 15 }
  0x42   :  { %s819_s20 = smov (!%p286_p6, %s52_s20), 15 }
  0x43   :  { %s72_s22 = scalar_select %p71_p8, %s648_s0, 0 }
  0x44   :  { %s291_s23 = sshll.u32 %s819_s20, 4 }
  0x45   :  { %s56_s29 = scalar_lea.hbm %s805_s1, %s291_s23 }
  0x46   :  { %s418_s30 = scalar_lea.hbm %s56_s29, 16  ;;  %p421_p10 = scmp.lt.u32.totalorder %s56_s29, %s805_s1 }
  0x47   :  { %p419_p2 = scmp.ne.s32.totalorder %s56_s29, %s418_s30  ;;  %p422_p11 = scmp.lt.u32.totalorder %s657_s8, %s418_s30 }
  0x48   :  { %p424_p7 = scmp.lt.u32.totalorder %s418_s30, %s56_s29 }
  0x49   :  { %p423_p12 = por %p422_p11, %p421_p10 }
  0x4b   :  { %p425_p13 = por %p424_p7, %p423_p12 }
  0x4d   :  { %p426_p0 = pnand %p425_p13, %p419_p2 }
  0x4f   :  { %429 = shalt.err (!%p426_p0)  }
  0x50   :  { %s430_s24 = scalar_lea.vmem %s67_s27, 16  ;;  %p435_p1 = scmp.lt.s32.totalorder %s67_s27, %s640_s21 }
  0x51   :  { %p431_p6 = scmp.ne.s32.totalorder %s67_s27, %s430_s24  ;;  %p436_p3 = scmp.lt.s32.totalorder %s666_s12, %s430_s24 }
  0x53   :  { %p437_p4 = por %p436_p3, %p435_p1 }
  0x55   :  { %p438_p5 = pnand %p437_p4, %p431_p6 }
  0x57   :  { %441 = shalt.err (!%p438_p5)  }
  0x58   :  { %69 = dma.hbm_to_vmem [thread:$0]  %s56_s29, 16, %s67_s27, [#allocation2 + $0x2] }
  0x59   :  { %s821_s22 = smov (!%p293_p9, %s72_s22), 15  ;;  %s608_s25 = smov [#allocation5 + $0x3]  }
  0x5a   :  { %s86_s5 = sshll.u32 %s608_s25, 4  ;;  %s709_s6 = sld [smem:[#allocation4 + $0x4]]  ;;  %s87_s5 = int_to_ptr.vmem [resolvable:$true] %s86_s5 }
  0x5b   :  { %s298_s7 = sshll.u32 %s821_s22, 4 }
  0x5c   :  { %s76_s11 = scalar_lea.hbm %s805_s1, %s298_s7 }
  0x5d   :  { %s442_s13 = scalar_lea.hbm %s76_s11, 16  ;;  %p445_p2 = scmp.lt.u32.totalorder %s76_s11, %s805_s1 }
  0x5e   :  { %p443_p8 = scmp.ne.s32.totalorder %s76_s11, %s442_s13  ;;  %p446_p10 = scmp.lt.u32.totalorder %s657_s8, %s442_s13 }
  0x5f   :  { %p448_p12 = scmp.lt.u32.totalorder %s442_s13, %s76_s11 }
  0x60   :  { %p447_p11 = por %p446_p10, %p445_p2 }
  0x62   :  { %p449_p9 = por %p448_p12, %p447_p11 }
  0x64   :  { %p450_p7 = pnand %p449_p9, %p443_p8 }
  0x66   :  { %453 = shalt.err (!%p450_p7)  }
  0x67   :  { %s454_s27 = scalar_lea.vmem %s87_s5, 16  ;;  %p459_p0 = scmp.lt.s32.totalorder %s87_s5, %s640_s21 }
  0x68   :  { %p455_p13 = scmp.ne.s32.totalorder %s87_s5, %s454_s27  ;;  %p460_p6 = scmp.lt.s32.totalorder %s666_s12, %s454_s27 }
  0x6a   :  { %p461_p1 = por %p460_p6, %p459_p0 }
  0x6c   :  { %p462_p3 = pnand %p461_p1, %p455_p13 }
  0x6e   :  { %465 = shalt.err (!%p462_p3)  }
  0x6f   :  { %89 = dma.hbm_to_vmem [thread:$0]  %s76_s11, 16, %s87_s5, [#allocation2 + $0x3] }
  0x70   :  { %s720_s0 = sld [smem:[#allocation4 + $0x5]]  ;;  %s609_s16 = smov [#allocation5 + $0x4]  }
  0x71   :  { %s106_s17 = sshll.u32 %s609_s16, 4  ;;  %p91_p4 = scmp.gt.s32.totalorder %s709_s6, 0  ;;  %s107_s17 = int_to_ptr.vmem [resolvable:$true] %s106_s17 }
  0x72   :  { %p300_p5 = scmp.lt.s32.totalorder %s709_s6, 15  ;;  %s724_s18 = sld [smem:[#allocation4 + $0x6]] }
  0x73   :  { %s823_s6 = smov (!%p91_p4, %s709_s6), 0  ;;  %s610_s19 = smov [#allocation5 + $0x5]  }
  0x74   :  { %s126_s20 = sshll.u32 %s610_s19, 4  ;;  %s825_s6 = smov (!%p300_p5, %s823_s6), 15  ;;  %s127_s20 = int_to_ptr.vmem [resolvable:$true] %s126_s20 }
  0x75   :  { %s305_s22 = sshll.u32 %s825_s6, 4 }
  0x76   :  { %p111_p8 = scmp.gt.s32.totalorder %s720_s0, 0  ;;  %s96_s28 = scalar_lea.hbm %s805_s1, %s305_s22 }
  0x77   :  { %s466_s29 = scalar_lea.hbm %s96_s28, 16  ;;  %p469_p12 = scmp.lt.u32.totalorder %s96_s28, %s805_s1 }
  0x78   :  { %p131_p10 = scmp.gt.s32.totalorder %s724_s18, 0  ;;  %p467_p11 = scmp.ne.s32.totalorder %s96_s28, %s466_s29 }
  0x79   :  { %p470_p9 = scmp.lt.u32.totalorder %s657_s8, %s466_s29  ;;  %p472_p13 = scmp.lt.u32.totalorder %s466_s29, %s96_s28 }
  0x7b   :  { %p471_p7 = por %p470_p9, %p469_p12 }
  0x7d   :  { %p473_p0 = por %p472_p13, %p471_p7 }
  0x7f   :  { %p474_p6 = pnand %p473_p0, %p467_p11 }
  0x81   :  { %477 = shalt.err (!%p474_p6)  }
  0x82   :  { %s478_s4 = scalar_lea.vmem %s107_s17, 16  ;;  %p483_p3 = scmp.lt.s32.totalorder %s107_s17, %s640_s21 }
  0x83   :  { %p479_p1 = scmp.ne.s32.totalorder %s107_s17, %s478_s4  ;;  %p484_p4 = scmp.lt.s32.totalorder %s666_s12, %s478_s4 }
  0x85   :  { %p485_p5 = por %p484_p4, %p483_p3 }
  0x87   :  { %p486_p2 = pnand %p485_p5, %p479_p1 }
  0x89   :  { %489 = shalt.err (!%p486_p2)  }
  0x8a   :  { %109 = dma.hbm_to_vmem [thread:$0]  %s96_s28, 16, %s107_s17, [#allocation2 + $0x4] }
  0x8b   :  { %s112_s24 = scalar_select %p111_p8, %s720_s0, 0 }
  0x8c   :  { %s132_s25 = scalar_select %p131_p10, %s724_s18, 0 }
  0x8d   :  { %p808_p11 = scmp.lt.s32.totalorder %s720_s0, 15  ;;  %p314_p12 = scmp.lt.s32.totalorder %s724_s18, 15 }
  0x8e   :  { %s748_s6 = sld [smem:[#allocation4 + $0x7]]  ;;  %s611_s11 = smov [#allocation5 + $0x6]  }
  0x8f   :  { %s827_s24 = smov (!%p808_p11, %s112_s24), 15  ;;  %s146_s13 = sshll.u32 %s611_s11, 4  ;;  %s147_s13 = int_to_ptr.vmem [resolvable:$true] %s146_s13 }
  0x90   :  { %s312_s5 = sshll.u32 %s827_s24, 4 }
  0x91   :  { %s116_s10 = scalar_lea.hbm %s805_s1, %s312_s5 }
  0x92   :  { %s490_s14 = scalar_lea.hbm %s116_s10, 16  ;;  %p493_p8 = scmp.lt.u32.totalorder %s116_s10, %s805_s1 }
  0x93   :  { %p491_p2 = scmp.ne.s32.totalorder %s116_s10, %s490_s14  ;;  %p494_p10 = scmp.lt.u32.totalorder %s657_s8, %s490_s14 }
  0x94   :  { %p496_p7 = scmp.lt.u32.totalorder %s490_s14, %s116_s10 }
  0x95   :  { %p495_p9 = por %p494_p10, %p493_p8 }
  0x97   :  { %p497_p13 = por %p496_p7, %p495_p9 }
  0x99   :  { %p498_p0 = pnand %p497_p13, %p491_p2 }
  0x9b   :  { %501 = shalt.err (!%p498_p0)  }
  0x9c   :  { %s502_s0 = scalar_lea.vmem %s127_s20, 16  ;;  %p507_p1 = scmp.lt.s32.totalorder %s127_s20, %s640_s21 }
  0x9d   :  { %p503_p6 = scmp.ne.s32.totalorder %s127_s20, %s502_s0  ;;  %p508_p3 = scmp.lt.s32.totalorder %s666_s12, %s502_s0 }
  0x9f   :  { %p509_p4 = por %p508_p3, %p507_p1 }
  0xa1   :  { %p510_p5 = pnand %p509_p4, %p503_p6 }
  0xa3   :  { %513 = shalt.err (!%p510_p5)  }
  0xa4   :  { %129 = dma.hbm_to_vmem [thread:$0]  %s116_s10, 16, %s127_s20, [#allocation2 + $0x5] }
  0xa5   :  { %s829_s25 = smov (!%p314_p12, %s132_s25), 15  ;;  %p151_p11 = scmp.gt.s32.totalorder %s748_s6, 0 }
  0xa6   :  { %s319_s16 = sshll.u32 %s829_s25, 4 }
  0xa7   :  { %s136_s22 = scalar_lea.hbm %s805_s1, %s319_s16 }
  0xa8   :  { %s514_s23 = scalar_lea.hbm %s136_s22, 16  ;;  %p517_p8 = scmp.lt.u32.totalorder %s136_s22, %s805_s1 }
  0xa9   :  { %p515_p2 = scmp.ne.s32.totalorder %s136_s22, %s514_s23  ;;  %p518_p10 = scmp.lt.u32.totalorder %s657_s8, %s514_s23 }
  0xaa   :  { %p520_p7 = scmp.lt.u32.totalorder %s514_s23, %s136_s22 }
  0xab   :  { %p519_p9 = por %p518_p10, %p517_p8 }
  0xad   :  { %p521_p13 = por %p520_p7, %p519_p9 }
  0xaf   :  { %p522_p0 = pnand %p521_p13, %p515_p2 }
  0xb1   :  { %525 = shalt.err (!%p522_p0)  }
  0xb2   :  { %s526_s18 = scalar_lea.vmem %s147_s13, 16  ;;  %p531_p6 = scmp.lt.s32.totalorder %s147_s13, %s640_s21 }
  0xb3   :  { %p527_p12 = scmp.ne.s32.totalorder %s147_s13, %s526_s18  ;;  %p532_p1 = scmp.lt.s32.totalorder %s666_s12, %s526_s18 }
  0xb5   :  { %p533_p3 = por %p532_p1, %p531_p6 }
  0xb7   :  { %p534_p4 = pnand %p533_p3, %p527_p12 }
  0xb9   :  { %537 = shalt.err (!%p534_p4)  }
  0xba   :  { %149 = dma.hbm_to_vmem [thread:$0]  %s136_s22, 16, %s147_s13, [#allocation2 + $0x6] }
  0xbb   :  { %s152_s20 = scalar_select %p151_p11, %s748_s6, 0 }
  0xbc   :  { %p321_p5 = scmp.lt.s32.totalorder %s748_s6, 15  ;;  %s612_s29 = smov [#allocation5 + $0x7]  }
  0xbd   :  { %s166_s30 = sshll.u32 %s612_s29, 4  ;;  %s167_s30 = int_to_ptr.vmem [resolvable:$true] %s166_s30 }
  0xbe   :  { %s831_s20 = smov (!%p321_p5, %s152_s20), 15 }
  0xbf   :  { %s326_s3 = sshll.u32 %s831_s20, 4 }
  0xc0   :  { %s156_s25 = scalar_lea.hbm %s805_s1, %s326_s3 }
  0xc1   :  { %s538_s5 = scalar_lea.hbm %s156_s25, 16  ;;  %p541_p8 = scmp.lt.u32.totalorder %s156_s25, %s805_s1 }
  0xc2   :  { %p539_p2 = scmp.ne.s32.totalorder %s156_s25, %s538_s5  ;;  %p542_p10 = scmp.lt.u32.totalorder %s657_s8, %s538_s5 }
  0xc3   :  { %p544_p7 = scmp.lt.u32.totalorder %s538_s5, %s156_s25 }
  0xc4   :  { %p543_p9 = por %p542_p10, %p541_p8 }
  0xc6   :  { %p545_p11 = por %p544_p7, %p543_p9 }
  0xc8   :  { %p546_p13 = pnand %p545_p11, %p539_p2 }
  0xca   :  { %549 = shalt.err (!%p546_p13)  }
  0xcb   :  { %s550_s6 = scalar_lea.vmem %s167_s30, 16  ;;  %p555_p12 = scmp.lt.s32.totalorder %s167_s30, %s640_s21 }
  0xcc   :  { %p551_p0 = scmp.ne.s32.totalorder %s167_s30, %s550_s6  ;;  %p556_p6 = scmp.lt.s32.totalorder %s666_s12, %s550_s6 }
  0xce   :  { %p557_p1 = por %p556_p6, %p555_p12 }
  0xd0   :  { %p558_p3 = pnand %p557_p1, %p551_p0 }
  0xd2   :  { %561 = shalt.err (!%p558_p3)  }
  0xd3   :  { %169 = dma.hbm_to_vmem [thread:$0]  %s156_s25, 16, %s167_s30, [#allocation2 + $0x7] }
  0xd4   :  { %586 = dma.done.wait [#allocation2], 16 }
  0xd5   :  { %587 = vsyncadd [#allocation2], 4294967280 }
  0xd6   :  { %588 = dma.done.wait [#allocation2 + $0x1], 16 }
  0xd7   :  { %589 = vsyncadd [#allocation2 + $0x1], 4294967280 }
  0xd8   :  { %590 = dma.done.wait [#allocation2 + $0x2], 16 }
  0xd9   :  { %591 = vsyncadd [#allocation2 + $0x2], 4294967280 }
  0xda   :  { %592 = dma.done.wait [#allocation2 + $0x3], 16 }
  0xdb   :  { %593 = vsyncadd [#allocation2 + $0x3], 4294967280 }
  0xdc   :  { %594 = dma.done.wait [#allocation2 + $0x4], 16 }
  0xdd   :  { %595 = vsyncadd [#allocation2 + $0x4], 4294967280 }
  0xde   :  { %596 = dma.done.wait [#allocation2 + $0x5], 16 }
  0xdf   :  { %597 = vsyncadd [#allocation2 + $0x5], 4294967280 }
  0xe0   :  { %598 = dma.done.wait [#allocation2 + $0x6], 16 }
  0xe1   :  { %599 = vsyncadd [#allocation2 + $0x6], 4294967280 }
  0xe2   :  { %600 = dma.done.wait [#allocation2 + $0x7], 16 }
  0xe3   :  { %601 = vsyncadd [#allocation2 + $0x7], 4294967280  ;;  %p563_p4 = scmp.ne.s32.totalorder %s640_s21, %s666_s12  ;;  %p568_p5 = scmp.lt.s32.totalorder %s666_s12, %s666_s12 }
  0xe4   :  { %p809_p2 = scmp.lt.s32.totalorder %s640_s21, %s640_s21 }
  0xe6   :  { %p569_p8 = por %p568_p5, %p809_p2 }
  0xe8   :  { %p570_p10 = pnand %p569_p8, %p563_p4 }
  0xea   :  { %573 = shalt.err (!%p570_p10)
}
  0xeb   :  { %s574_s10 = scalar_lea.hbm %s806_s2, 128 }
  0xec   :  { %p575_p9 = scmp.ne.s32.totalorder %s806_s2, %s574_s10  ;;  %p578_p7 = scmp.lt.u32.totalorder %s574_s10, %s806_s2 }
  0xee   :  { %p580_p11 = pnand %p578_p7, %p575_p9 }
  0xf0   :  { %583 = shalt.err (!%p580_p11)
}
  0xf1   :  { %196 = dma.vmem_to_hbm [thread:$0]  %s640_s21, 128, %s806_s2, [#allocation6]  }
  0xf2   :  { %602 = dma.done.wait [#allocation6], 128  }
  0xf3   :  { %603 = vsyncadd [#allocation6], 4294967168 }
  0xf4   :  { %200 = vsyncpa [#allocation6], 1 }
  0xf5   :  { %201 = vsyncmov [#allocation2] }
  0xf8   :  { %s202_s0 = vpop.sfrf %201 }
  0xf9   :  { %p327_p13 = scmp.ne.s32.totalorder %s202_s0, 0 }
  0xfb   :  { %206 = shalt.err (%p327_p13)  }
  0xfc   :  { %208 = vsyncmov [#allocation2 + $0x1] }
  0xff   :  { %s209_s16 = vpop.sfrf %208 }
 0x100   :  { %p328_p0 = scmp.ne.s32.totalorder %s209_s16, 0 }
 0x102   :  { %213 = shalt.err (%p328_p0)  }
 0x103   :  { %215 = vsyncmov [#allocation2 + $0x2] }
 0x106   :  { %s216_s17 = vpop.sfrf %215 }
 0x107   :  { %p329_p12 = scmp.ne.s32.totalorder %s216_s17, 0 }
 0x109   :  { %220 = shalt.err (%p329_p12)  }
 0x10a   :  { %222 = vsyncmov [#allocation2 + $0x3] }
 0x10d   :  { %s223_s19 = vpop.sfrf %222 }
 0x10e   :  { %p330_p6 = scmp.ne.s32.totalorder %s223_s19, 0 }
 0x110   :  { %227 = shalt.err (%p330_p6)  }
 0x111   :  { %229 = vsyncmov [#allocation2 + $0x4] }
 0x114   :  { %s230_s2 = vpop.sfrf %229 }
 0x115   :  { %p331_p1 = scmp.ne.s32.totalorder %s230_s2, 0 }
 0x117   :  { %234 = shalt.err (%p331_p1)  }
 0x118   :  { %236 = vsyncmov [#allocation2 + $0x5] }
 0x11b   :  { %s237_s21 = vpop.sfrf %236 }
 0x11c   :  { %p332_p3 = scmp.ne.s32.totalorder %s237_s21, 0 }
 0x11e   :  { %241 = shalt.err (%p332_p3)  }
 0x11f   :  { %243 = vsyncmov [#allocation2 + $0x6] }
 0x122   :  { %s244_s22 = vpop.sfrf %243 }
 0x123   :  { %p333_p4 = scmp.ne.s32.totalorder %s244_s22, 0 }
 0x125   :  { %248 = shalt.err (%p333_p4)  }
 0x126   :  { %250 = vsyncmov [#allocation2 + $0x7] }
 0x129   :  { %s251_s23 = vpop.sfrf %250 }
 0x12a   :  { %p334_p5 = scmp.ne.s32.totalorder %s251_s23, 0 }
 0x12c   :  { %255 = shalt.err (%p334_p5)  }

</bundles_post_ra>
